<compile_context>
chip_gen: v7x
topology: tpu7x:2x2x1
jax: 0.10.0
libtpu: 0.0.40
codegen_flags: <defaults>
</compile_context>

<pallas_src>
import functools

import jax
import jax.numpy as jnp
from jax.experimental import pallas as pl
from jax.experimental.pallas import tpu as pltpu


def _decoder_kernel_small(x_ref, m_ref, wf_ref, ws_ref, out_ref, *, k_total):
    """Single-tile path (K < 128): the whole frame axis fits one block.

    x_ref, m_ref  : (1, N, K)    native [batch, basis, frames]
    wf_ref, ws_ref: (H, N)       first / second half of basis-signal weight
    out_ref       : (1, H, K+1)  all K+1 overlap-added subframes, lane-dense
    """
    est = x_ref[0] * m_ref[0]                                               # (N, K)
    first = jnp.dot(wf_ref[...], est, preferred_element_type=jnp.float32)   # (H, K)
    second = jnp.dot(ws_ref[...], est, preferred_element_type=jnp.float32)  # (H, K)

    rolled = pltpu.roll(second, shift=1, axis=1)          # col c <- second[:, c-1]
    lane = jax.lax.broadcasted_iota(jnp.int32, (1, k_total), 1)
    shifted = jnp.where(lane == 0, 0.0, rolled)           # no previous frame at col 0

    out_ref[0, :, :k_total] = (first + shifted).astype(out_ref.dtype)
    # Final subframe (index K) = second half of the last frame.
    out_ref[0, :, k_total:] = rolled[:, 0:1].astype(out_ref.dtype)


def _decoder_kernel_tiled(x_ref, m_ref, wf_ref, ws_ref, seam_ref, out_ref, *,
                          k_total, tk, num_kt):
    """Tiled path: grid = (batch, frame tile); fully parallel, no carry.

    x_ref, m_ref  : (1, N, tk)       native [batch, basis, frames] tile
    wf_ref, ws_ref: (H, N)
    seam_ref      : (1, H, num_kt)   precomputed tile-boundary columns (col 0 = 0)
    out_ref       : (1, H, tk)       lane-dense overlap-added subframes
    """
    kt = pl.program_id(1)

    est = x_ref[0] * m_ref[0]                                               # (N, tk)
    first = jnp.dot(wf_ref[...], est, preferred_element_type=jnp.float32)   # (H, tk)
    second = jnp.dot(ws_ref[...], est, preferred_element_type=jnp.float32)  # (H, tk)

    lane = jax.lax.broadcasted_iota(jnp.int32, (1, tk), 1)
    # Zero the first-half contribution for global frame columns >= K.  This is
    # both the "final subframe has no first half" rule and the mask that keeps
    # OOB-padded / re-read garbage out of the last tile.  Masking the (H, tk)
    # result instead of the (N, tk) input is ~N/H x cheaper (perf review).
    first = jnp.where(lane + kt * tk < k_total, first, 0.0)

    # Second-half contribution, shifted right by one frame.  Column 0 of the
    # tile comes from the previous tile's last frame -> precomputed seam.
    sel = jax.lax.broadcasted_iota(jnp.int32, (1, num_kt), 1) == kt
    seam_col = jnp.sum(jnp.where(sel, seam_ref[0], 0.0),
                       axis=1, keepdims=True)                               # (H, 1)
    rolled = pltpu.roll(second, shift=1, axis=1)           # col c <- second[:, c-1]
    shifted = jnp.where(lane == 0, seam_col, rolled)

    out_ref[0] = (first + shifted).astype(out_ref.dtype)


def decoder_forward(mixture_w, est_mask, weight, *, max_tk=2048):
    """mixture_w, est_mask: [M, N, K] (native layout); weight: [L, N] (nn.Linear)."""
    M, N, K = mixture_w.shape
    L, Nw = weight.shape
    assert Nw == N
    assert L % 2 == 0, "overlap_and_add with frame_step = L//2 assumes even L"
    H = L // 2
    dtype = mixture_w.dtype
    itemsize = jnp.dtype(dtype).itemsize

    wf = weight[:H, :]                      # [H, N]  (tiny glue)
    ws = weight[H:, :]                      # [H, N]  (tiny glue)

    if K < 128:
        # ---- single-tile path: full-dim blocks everywhere (no 128 constraint) ----
        vmem_need = (2 * 2 * N * K + 2 * H * (K + 1) + 4 * H * N) * itemsize
        vmem_limit = int(min(max(2 * vmem_need, 8 << 20), 56 << 20))
        subs = pl.pallas_call(
            functools.partial(_decoder_kernel_small, k_total=K),
            out_shape=jax.ShapeDtypeStruct((M, H, K + 1), dtype),
            grid_spec=pltpu.PrefetchScalarGridSpec(
                num_scalar_prefetch=0,
                grid=(M,),
                in_specs=[
                    pl.BlockSpec((1, N, K), lambda b: (b, 0, 0)),
                    pl.BlockSpec((1, N, K), lambda b: (b, 0, 0)),
                    pl.BlockSpec((H, N), lambda b: (0, 0)),
                    pl.BlockSpec((H, N), lambda b: (0, 0)),
                ],
                out_specs=pl.BlockSpec((1, H, K + 1), lambda b: (b, 0, 0)),
            ),
            compiler_params=pltpu.CompilerParams(
                dimension_semantics=("parallel",),
                vmem_limit_bytes=vmem_limit),
        )(mixture_w, est_mask, wf, ws)
    else:
        # ---- tiled path: balanced 128-aligned frame tiles, grid over K+1 columns ----
        K_eff = K + 1

        VMEM_BUDGET = 40 << 20                              # safe on v5e/v6e/v7x
        bytes_per_col = (2 * 2 * N + 2 * H) * itemsize      # dbl-buffered ins + out
        tk_budget = max(((VMEM_BUDGET // bytes_per_col) // 128) * 128, 128)
        max_tk_eff = max(min(max_tk, tk_budget), 128)

        n = max(pl.cdiv(K_eff, max_tk_eff), 1)
        tk = ((pl.cdiv(K_eff, n) + 127) // 128) * 128
        while tk > K:                       # K >= 128, so terminates at tk == 128
            n += 1
            tk = ((pl.cdiv(K_eff, n) + 127) // 128) * 128
        tk = min(tk, max_tk_eff)
        num_kt = pl.cdiv(K_eff, tk)
        k_pad = num_kt * tk
        in_last = pl.cdiv(K, tk) - 1        # last in-bounds input block on frame axis

        # Tile-boundary "seam" columns: second-half contribution crossing each
        # tile boundary (global frame column kt*tk - 1).  Tiny precompute that
        # removes the cross-tile carry so both grid axes stay parallel.
        cols = slice(tk - 1, None, tk)
        est_b = (mixture_w[:, :, cols][:, :, :num_kt - 1] *
                 est_mask[:, :, cols][:, :, :num_kt - 1]).astype(jnp.float32)
        seam = jnp.einsum('ln,mnk->mlk', ws.astype(jnp.float32), est_b)
        seam = jnp.concatenate(
            [jnp.zeros((M, H, 1), jnp.float32), seam], axis=-1)   # [M, H, num_kt]

        tile_bytes = ((2 * 2 * N * tk + 2 * H * tk + 4 * H * N) * itemsize
                      + 2 * H * num_kt * 4)
        vmem_limit = int(min(max(tile_bytes * 1.5, 8 << 20) + (2 << 20), 56 << 20))

        cost = pl.CostEstimate(
            flops=2 * M * N * L * K + M * N * K,
            transcendentals=0,
            bytes_accessed=(2 * M * N * K + M * H * k_pad + L * N) * itemsize,
        )

        kernel = functools.partial(_decoder_kernel_tiled,
                                   k_total=K, tk=tk, num_kt=num_kt)

        main = pl.pallas_call(
            kernel,
            out_shape=jax.ShapeDtypeStruct((M, H, k_pad), dtype),
            grid_spec=pltpu.PrefetchScalarGridSpec(
                num_scalar_prefetch=0,
                grid=(M, num_kt),
                in_specs=[
                    pl.BlockSpec((1, N, tk),
                                 lambda b, k: (b, 0, jnp.minimum(k, in_last))),
                    pl.BlockSpec((1, N, tk),
                                 lambda b, k: (b, 0, jnp.minimum(k, in_last))),
                    pl.BlockSpec((H, N), lambda b, k: (0, 0)),
                    pl.BlockSpec((H, N), lambda b, k: (0, 0)),
                    pl.BlockSpec((1, H, num_kt), lambda b, k: (b, 0, 0)),
                ],
                out_specs=pl.BlockSpec((1, H, tk), lambda b, k: (b, 0, k)),
            ),
            compiler_params=pltpu.CompilerParams(
                dimension_semantics=("parallel", "parallel"),
                vmem_limit_bytes=vmem_limit),
            cost_estimate=cost,
        )(mixture_w, est_mask, wf, ws, seam)

        subs = main[:, :, :K + 1]                           # [M, H, K+1]

    # Small layout glue to the flat [M, (K-1)*H + L] == [M, (K+1)*H] signal.
    return jnp.transpose(subs, (0, 2, 1)).reshape(M, (K + 1) * H)


def decoder_reference(mixture_w, est_mask, weight):
    """Pure-JAX reference mirroring the PyTorch forward semantics."""
    M, N, K = mixture_w.shape
    L = weight.shape[0]
    H = L // 2
    est = jnp.transpose(mixture_w * est_mask, (0, 2, 1))        # [M, K, N]
    frames = est @ weight.T                                     # [M, K, L]
    out = jnp.zeros((M, K + 1, H), frames.dtype)
    out = out.at[:, :K, :].add(frames[:, :, :H])
    out = out.at[:, 1:, :].add(frames[:, :, H:])
    return out.reshape(M, -1)


if __name__ == "__main__":
    key = jax.random.PRNGKey(0)
    k_mix, k_mask, k_w = jax.random.split(key, 3)

    M, N, L = 2, 32, 8
    bound = 1.0 / (N ** 0.5)
    weight = jax.random.uniform(k_w, (L, N), minval=-bound, maxval=bound,
                                dtype=jnp.float32)

    # --- config 1: tiny shapes, single-tile path ---
    K = 16
    mixture_w = jax.random.normal(k_mix, (M, N, K), dtype=jnp.float32)
    est_mask = jax.random.uniform(k_mask, (M, N, K), dtype=jnp.float32)
    result = decoder_forward(mixture_w, est_mask, weight)
    jax.block_until_ready(result)
    ref = decoder_reference(mixture_w, est_mask, weight)
    assert result.shape == (M, (K - 1) * (L // 2) + L), result.shape
    assert jnp.allclose(result, ref, rtol=1e-3, atol=1e-3)

    # --- config 2: tiled-K path with a ragged last tile + seam ---
    K2 = 200
    mixture_w2 = jax.random.normal(k_mix, (M, N, K2), dtype=jnp.float32)
    est_mask2 = jax.random.uniform(k_mask, (M, N, K2), dtype=jnp.float32)
    result2 = decoder_forward(mixture_w2, est_mask2, weight, max_tk=128)
    jax.block_until_ready(result2)
    ref2 = decoder_reference(mixture_w2, est_mask2, weight)
    assert result2.shape == (M, (K2 - 1) * (L // 2) + L), result2.shape
    assert jnp.allclose(result2, ref2, rtol=1e-3, atol=1e-3)

    # --- config 3: K an exact multiple of the tile (extra seam-only tile) ---
    K3 = 256
    mixture_w3 = jax.random.normal(k_mix, (M, N, K3), dtype=jnp.float32)
    est_mask3 = jax.random.uniform(k_mask, (M, N, K3), dtype=jnp.float32)
    result3 = decoder_forward(mixture_w3, est_mask3, weight, max_tk=128)
    jax.block_until_ready(result3)
    ref3 = decoder_reference(mixture_w3, est_mask3, weight)
    assert result3.shape == (M, (K3 - 1) * (L // 2) + L), result3.shape
    assert jnp.allclose(result3, ref3, rtol=1e-3, atol=1e-3)

    print("KERNEL_OK")
</pallas_src>

<mosaic_0001>
module attributes {stable_mosaic.version = 11 : i64} {
  func.func @_decoder_kernel_small(%arg0: i32, %arg1: memref<1x32x16xf32, #tpu.memory_space<vmem>>, %arg2: memref<1x32x16xf32, #tpu.memory_space<vmem>>, %arg3: memref<4x32xf32, #tpu.memory_space<vmem>>, %arg4: memref<4x32xf32, #tpu.memory_space<vmem>>, %arg5: memref<1x4x17xf32, #tpu.memory_space<vmem>>) attributes {dimension_semantics = [#tpu.dimension_semantics<parallel>], iteration_bounds = array<i64: 2>, scalar_prefetch = 0 : i64, scratch_operands = 0 : i64, tpu.core_type = #tpu.core_type<tc>, window_params = [{transform_indices = @transform_0, window_bounds = array<i64: 1, 32, 16>}, {transform_indices = @transform_1, window_bounds = array<i64: 1, 32, 16>}, {pipeline_mode = #tpu.pipeline_mode<synchronous>, transform_indices = @transform_2, window_bounds = array<i64: 4, 32>}, {pipeline_mode = #tpu.pipeline_mode<synchronous>, transform_indices = @transform_3, window_bounds = array<i64: 4, 32>}, {transform_indices = @transform_4, window_bounds = array<i64: 1, 4, 17>}]} {
    %c0 = arith.constant 0 : index
    %c0_0 = arith.constant 0 : index
    %c0_1 = arith.constant 0 : index
    %0 = vector.load %arg1[%c0, %c0_0, %c0_1] : memref<1x32x16xf32, #tpu.memory_space<vmem>>, vector<1x32x16xf32>
    %1 = vector.shape_cast %0 : vector<1x32x16xf32> to vector<32x16xf32>
    %c0_2 = arith.constant 0 : index
    %c0_3 = arith.constant 0 : index
    %c0_4 = arith.constant 0 : index
    %2 = vector.load %arg2[%c0_2, %c0_3, %c0_4] : memref<1x32x16xf32, #tpu.memory_space<vmem>>, vector<1x32x16xf32>
    %3 = vector.shape_cast %2 : vector<1x32x16xf32> to vector<32x16xf32>
    %4 = arith.mulf %1, %3 : vector<32x16xf32>
    %c0_5 = arith.constant 0 : index
    %c0_6 = arith.constant 0 : index
    %5 = vector.load %arg3[%c0_5, %c0_6] : memref<4x32xf32, #tpu.memory_space<vmem>>, vector<4x32xf32>
    %cst = arith.constant dense<0.000000e+00> : vector<4x16xf32>
    %6 = tpu.matmul %5, %4, %cst {dimension_numbers = #tpu.dot_dimension_numbers<[1], [0], [0], [1], [0, 0, 1, 1], [], []>} : vector<4x32xf32>, vector<32x16xf32>, vector<4x16xf32> -> vector<4x16xf32>
    %c0_7 = arith.constant 0 : index
    %c0_8 = arith.constant 0 : index
    %7 = vector.load %arg4[%c0_7, %c0_8] : memref<4x32xf32, #tpu.memory_space<vmem>>, vector<4x32xf32>
    %cst_9 = arith.constant dense<0.000000e+00> : vector<4x16xf32>
    %8 = tpu.matmul %7, %4, %cst_9 {dimension_numbers = #tpu.dot_dimension_numbers<[1], [0], [0], [1], [0, 0, 1, 1], [], []>} : vector<4x32xf32>, vector<32x16xf32>, vector<4x16xf32> -> vector<4x16xf32>
    %c1_i32 = arith.constant 1 : i32
    %9 = tpu.dynamic_rotate %8 by %c1_i32 dim 1 : vector<4x16xf32>, i32 -> vector<4x16xf32>
    %10 = tpu.iota {dimensions = array<i32: 1>} : vector<1x16xi32>
    %c0_i32 = arith.constant 0 : i32
    %11 = vector.broadcast %c0_i32 : i32 to vector<1x16xi32>
    %12 = arith.cmpi eq, %10, %11 : vector<1x16xi32>
    %cst_10 = arith.constant 0.000000e+00 : f32
    %13 = vector.shape_cast %12 : vector<1x16xi1> to vector<1x16xi1>
    %14 = vector.broadcast %13 : vector<1x16xi1> to vector<4x16xi1>
    %15 = vector.broadcast %cst_10 : f32 to vector<4x16xf32>
    %16 = arith.select %14, %15, %9 : vector<4x16xi1>, vector<4x16xf32>
    %17 = arith.addf %6, %16 : vector<4x16xf32>
    %c0_11 = arith.constant 0 : index
    %c0_12 = arith.constant 0 : index
    %c0_13 = arith.constant 0 : index
    %18 = vector.load %arg5[%c0_11, %c0_12, %c0_13] : memref<1x4x17xf32, #tpu.memory_space<vmem>>, vector<1x4x16xf32>
    %19 = vector.shape_cast %18 : vector<1x4x16xf32> to vector<4x16xf32>
    %20 = vector.shape_cast %17 : vector<4x16xf32> to vector<1x4x16xf32>
    tpu.vector_store %arg5[%c0_11, %c0_12, %c0_13], %20 {strides = array<i32>} : memref<1x4x17xf32, #tpu.memory_space<vmem>>, vector<1x4x16xf32>,
    %21 = vector.extract_strided_slice %9 {offsets = [0, 0], sizes = [4, 1], strides = [1, 1]} : vector<4x16xf32> to vector<4x1xf32>
    %c0_14 = arith.constant 0 : index
    %c0_15 = arith.constant 0 : index
    %c16 = arith.constant 16 : index
    %22 = vector.load %arg5[%c0_14, %c0_15, %c16] : memref<1x4x17xf32, #tpu.memory_space<vmem>>, vector<1x4x1xf32>
    %23 = vector.shape_cast %22 : vector<1x4x1xf32> to vector<4x1xf32>
    %24 = vector.shape_cast %21 : vector<4x1xf32> to vector<1x4x1xf32>
    tpu.vector_store %arg5[%c0_14, %c0_15, %c16], %24 {strides = array<i32>} : memref<1x4x17xf32, #tpu.memory_space<vmem>>, vector<1x4x1xf32>,
    return
  }
  func.func @transform_0(%arg0: i32) -> (i32, i32, i32) {
    %c0_i32 = arith.constant 0 : i32
    %c0_i32_0 = arith.constant 0 : i32
    %c0_i32_1 = arith.constant 0 : i32
    return %arg0, %c0_i32, %c0_i32_0 : i32, i32, i32
  }
  func.func @transform_1(%arg0: i32) -> (i32, i32, i32) {
    %c0_i32 = arith.constant 0 : i32
    %c0_i32_0 = arith.constant 0 : i32
    %c0_i32_1 = arith.constant 0 : i32
    return %arg0, %c0_i32, %c0_i32_0 : i32, i32, i32
  }
  func.func @transform_2(%arg0: i32) -> (i32, i32) {
    %c0_i32 = arith.constant 0 : i32
    %c0_i32_0 = arith.constant 0 : i32
    %c0_i32_1 = arith.constant 0 : i32
    return %c0_i32, %c0_i32_0 : i32, i32
  }
  func.func @transform_3(%arg0: i32) -> (i32, i32) {
    %c0_i32 = arith.constant 0 : i32
    %c0_i32_0 = arith.constant 0 : i32
    %c0_i32_1 = arith.constant 0 : i32
    return %c0_i32, %c0_i32_0 : i32, i32
  }
  func.func @transform_4(%arg0: i32) -> (i32, i32, i32) {
    %c0_i32 = arith.constant 0 : i32
    %c0_i32_0 = arith.constant 0 : i32
    %c0_i32_1 = arith.constant 0 : i32
    return %arg0, %c0_i32, %c0_i32_0 : i32, i32, i32
  }
}

</mosaic_0001>

<bundles_post_ra>
// kernel: tpu_custom_call.1
= control target key start
LH: loop header
LB: loop body
LE: loop exit
PB: predicated region body
PF: predicated region fallthrough
CT: control target
= control target key end

     0   :  { %9 = vsyncpa [#allocation3], 0  ;;  %s797_s0 = inlined_call_operand.vmem [shape: f32[2,32,16], index: 0, kind: input, shape index: {}]   ;;  %s798_s1 = inlined_call_operand.vmem [shape: f32[2,32,16], index: 1, kind: input, shape index: {}]   ;;  %s799_s2 = inlined_call_operand.vmem [shape: f32[4,32], index: 2, kind: input, shape index: {}]   ;;  %s800_s3 = inlined_call_operand.vmem [shape: f32[4,32], index: 3, kind: input, shape index: {}]   ;;  %s801_s4 = inlined_call_operand.hbm [shape: f32[2,4,17], index: 4, kind: output, shape index: {}]  }
   0x1   :  { %11 = vsyncpa [#allocation3 + $0x1], 0  ;;  %s688_s15 = smov 0   ;;  %s690_s16 = smov 0  }
   0x2   :  { %s692_s17 = smov 0   ;;  %s694_s18 = smov 0  }
   0x3 LB: > { %s709_s19 = sadd.s32 4294967295, %s654_s18   ;;  %s486_s20 = sadd.s32 4294967294, %s654_s18   ;;  %s654_s18 = sphi %s694_s18, %s807_s18   ;;  %s650_s17 = sphi %s692_s17, %s806_s17   ;;  %s646_s16 = sphi %s690_s16, %s805_s16   ;;  %s642_s15 = sphi %s688_s15, %s804_s15  }
   0x4   : > { %s713_s21 = sadd.s32 1, %s654_s18   ;;  %s118_s22 = sadd.s32 1, %s650_s17 }
   0x5   : > { %s115_s23 = ssub.s32 %s654_s18, %s713_s21  ;;  %p128_p0 = scmp.ne.s32.totalorder %s650_s17, %s646_s16 }
   0x6   : > { %p116_p1 = scmp.eq.s32.totalorder %s115_s23, 0  ;;  %p129_p2 = scmp.eq.s32.totalorder %s709_s19, 1 }
   0x7   : > { %p134_p3 = scmp.ne.s32.totalorder %s646_s16, %s642_s15  ;;  %p135_p4 = scmp.eq.s32.totalorder %s486_s20, 1 }
   0x8   : > { %s724_s24 = scalar_select %p116_p1, %s650_s17, %s118_s22  }
   0x9   : > { %p726_p5 = por %p129_p2, %p128_p0  ;;  %p730_p6 = por %p135_p4, %p134_p3 }
   0xa   : > { %p489_p7 = scmp.ge.s32.totalorder %s654_s18, 1  ;;  %p175_p8 = scmp.lt.s32.totalorder %s654_s18, 3 }
   0xc   : > { %p176_p9 = pnand %p489_p7, %p175_p8 }
   0xd   : > { %p206_p10 = scmp.lt.s32.totalorder (!%p176_p9), %s709_s19, 1  ;;  %v656_v0 = vmov (!%p176_p9), 0.0|0.0   ;;  %vm657_vm0 = vmmov (!%p176_p9), 0   ;;  %v658_v1 = vmov (!%p176_p9), 0.0   ;;  %v229_v16 = vld [vmem:[%s800_s3] sm:$0xf] (!%p176_p9)  ;;  %v311_v26 = vlaneseq (!%p176_p9) }
   0xe   : > { %179 = sbr.rel (%p176_p9) target bundleno = 615 (0x267), region = 36  ;;  %535 = vmatprep.subr.bf16.mxu0 (!%p176_p9), %v656_v0  ;;  %521 = vmatprep.mubr.msk.f32.mxu0 (!%p176_p9), %vm657_vm0, %v658_v1  ;;  %vm230_vm1 = vcmask (!%p176_p9), 261120   ;;  %v228_v17 = vld [vmem:[%s799_s2] sm:$0xf] (!%p176_p9)  ;;  %s659_s13 = smov (!%p176_p9), 16   ;;  %vm304_vm2 = vcmask (!%p176_p9), 1047680  }
   0xf   : > { %541 = vmatprep.subr.bf16.mxu1 (!%p176_p9), %v656_v0  ;;  %532 = vmatprep.mubr.msk.f32.mxu1 (!%p176_p9), %vm657_vm0, %v658_v1  ;;  %s660_s14 = smov (!%p176_p9), 113   ;;  %s661_s20 = smov (!%p176_p9), 1   ;;  %v312_v27 = vand.u32 (!%p176_p9), 127, %v311_v26  ;;  %vm394_vm4 = vcmask (!%p176_p9), 125952   ;;  %vm399_vm5 = vcmask (!%p176_p9), 134272  }
  0x10   : > { %s203_s22 = sand.u32 (!%p176_p9), 1, %s646_s16  }
  0x11   : > { %s490_s23 = sshll.u32 (!%p176_p9), %s203_s22, 2  ;;  %vm313_vm3 = vcmp.eq.s32.totalorder (!%p176_p9), %v312_v27, 0 }
  0x15   : > { %s207_s27 = scalar_select %p206_p10, %s709_s19, 1 }
  0x17   : > { %s501_s28 = sshll.u32 %s207_s27, 5  ;;  %s498_s27 = sshll.u32 %s709_s19, 6 }
  0x18   : > { %s210_s5 = scalar_lea.vmem %s797_s0, %s501_s28  ;;  %s215_s8 = scalar_lea.vmem %s798_s1, %s501_s28 }
  0x19   : > { %v216_v2 = vld [vmem:[%s210_s5] sm:$0xff]  ;;  %v217_v3 = vld [vmem:[%s210_s5 + $0x8] sm:$0xff]  ;;  %v218_v7 = vld [vmem:[%s210_s5 + $0x10] sm:$0xff]  ;;  %s205_s28 = scalar_lea.vmem [#allocation2], %s490_s23  ;;  %s755_s6 = scalar_lea.hbm %s801_s4, %s498_s27 }
  0x1a   : > { %v220_v4 = vld [vmem:[%s215_s8] sm:$0xff]  ;;  %v221_v5 = vld [vmem:[%s215_s8 + $0x8] sm:$0xff]  ;;  %v219_v8 = vld [vmem:[%s210_s5 + $0x18] sm:$0xff]  ;;  %s415_s29 = sshll.u32 %s205_s28, 4  ;;  %s402_s19 = scalar_lea.sflag [#allocation3], %s203_s22  ;;  %s757_s29 = int_to_ptr.vmem [resolvable:$true] %s415_s29 }
  0x1b   : > { %v224_v6 = vmul.f32 %v220_v4, %v216_v2  ;;  %v225_v9 = vmul.f32 %v221_v5, %v217_v3  ;;  %v222_v10 = vld [vmem:[%s215_s8 + $0x10] sm:$0xff]  ;;  %v223_v11 = vld [vmem:[%s215_s8 + $0x18] sm:$0xff]  ;;  %s592_s7 = scalar_lea.vmem %s757_s29, 64  ;;  %s662_s8 = smov [#allocation2]  }
  0x1c   : > { %v226_v12 = vmul.f32 %v222_v10, %v218_v7  ;;  %v227_v13 = vmul.f32 %v223_v11, %v219_v8  ;;  %p593_p11 = scmp.ne.s32.totalorder %s757_s29, %s592_s7  ;;  %s596_s9 = sshll.u32 %s662_s8, 4  ;;  %s597_s9 = int_to_ptr.vmem [resolvable:$false] %s596_s9 }
  0x1d   : > { %v536_v14 = vpack.c.bf16 %v225_v9, %v224_v6  ;;  %s598_s10 = scalar_lea.vmem %s597_s9, 128  ;;  %p599_p0 = scmp.lt.s32.totalorder %s757_s29, %s597_s9 }
  0x1e   : > { %v539_v15 = vpack.c.bf16 %v227_v13, %v226_v12  ;;  %p594_p12 = pnand %p593_p11, %p726_p5  ;;  %p600_p1 = scmp.lt.s32.totalorder %s598_s10, %s592_s7 }
  0x1f   : > { %537 = vmatpush3.bf16.msra.mxu0 %v536_v14  ;;  %543 = vmatpush3.bf16.msra.mxu1 %v536_v14 }
  0x20   : > { %538 = vmatprep.subr.bf16.mxu0 %v656_v0  ;;  %544 = vmatprep.subr.bf16.mxu1 %v656_v0  ;;  %p595_p13 = pneg %p594_p12  ;;  %p601_p2 = por %p600_p1, %p599_p0 }
  0x22   : > { %p602_p3 = pnand %p601_p2, %p595_p13 }
  0x23   : > { %540 = vmatpush3.bf16.msra.mxu0 %v539_v15  ;;  %546 = vmatpush3.bf16.msra.mxu1 %v539_v15 }
  0x26   : > { %522 = vmatmul.mubr.msk.f32.vlgmr.msra.gmra.mrb[0].mxu0 %vm230_vm1, %v229_v16  ;;  %533 = vmatmul.mubr.msk.f32.vlgmr.msra.gmra.mrb[0].mxu1 %vm230_vm1, %v228_v17 }
  0xf9   : > { %v300_v18 = vpop.f32.mrb[0].mxu0  ;;  %v390_v22 = vpop.f32.mrb[0].mxu1 }
  0xfa   : > { %305 = vrot.lane.b32.xlu0 %v300_v18, %s659_s13  ;;  %v523_v19 = vpop.f32.mrb[1].mxu0  ;;  %v534_v23 = vpop.f32.mrb[1].mxu1 }
 0x16c   : > { %v306_v20 = vpop.permute.xlu0 %305 }
 0x16d   : > { %v307_v21 = vsel %vm304_vm2, %v306_v20, %v300_v18 }
 0x16e   : > { %308 = vrot.lane.b32.xlu0 %v307_v21, %s659_s13 }
 0x1e0   : > { %v309_v24 = vpop.permute.xlu0 %308 }
 0x1e1   : > { %v310_v25 = vsel %vm304_vm2, %v309_v24, %v300_v18 }
 0x1e2   : > { %317 = vrot.lane.b32.xlu1 %v310_v25, %s660_s14 }
 0x1e6   : > { %396 = vrot.lane.b32.xlu1 %v310_v25, %s661_s20 }
 0x254   : > { %v318_v28 = vpop.permute.xlu1 %317 }
 0x255   : > { %v320_v29 = vsel %vm313_vm3, 0.0, %v318_v28 }
 0x256   : > { %v391_v30 = vadd.f32 %v390_v22, %v320_v29 }
 0x258   : > { %v397_v31 = vpop.permute.xlu1 %396  ;;  %395 = vst.msk [vmem:[%s205_s28] sm:$0xf] %vm394_vm4, %v391_v30 }
 0x259   : > { %400 = vst.msk [vmem:[%s205_s28] sm:$0xf] %vm399_vm5, %v397_v31 }
 0x25a   : > { %605 = shalt.err (!%p602_p3)
}
 0x25b   : > { %s606_s11 = scalar_lea.hbm %s755_s6, 64  ;;  %s610_s14 = scalar_lea.hbm %s801_s4, 128 }
 0x25c   : > { %p607_p4 = scmp.ne.s32.totalorder %s755_s6, %s606_s11  ;;  %p611_p9 = scmp.lt.u32.totalorder %s755_s6, %s801_s4 }
 0x25d   : > { %p612_p10 = scmp.lt.u32.totalorder %s610_s14, %s606_s11  ;;  %p614_p12 = scmp.lt.u32.totalorder %s606_s11, %s755_s6 }
 0x25e   : > { %p608_p7 = pnand %p607_p4, %p726_p5 }
 0x25f   : > { %p613_p11 = por %p612_p10, %p611_p9 }
 0x260   : > { %p609_p8 = pneg %p608_p7 }
 0x261   : > { %p615_p13 = por %p614_p12, %p613_p11 }
 0x263   : > { %p616_p0 = pnand %p615_p13, %p609_p8 }
 0x265   : > { %619 = shalt.err (!%p616_p0)
}
 0x266   : > { %547 = dma.vmem_to_hbm [thread:$0]  (%p726_p5), %s757_s29, 64, %s755_s6, %s402_s19  }
 0x267 PF: > { %p553_p1 = scmp.ge.s32.totalorder %s654_s18, 2  ;;  %s427_s23 = sand.u32 1, %s642_s15  }
 0x268   : > { %s428_s27 = scalar_lea.sflag [#allocation3], %s427_s23 }
 0x269   : > { %p550_p2 = pnand %p553_p1, %p730_p6 }
 0x26b   : > { %637 = dma.done.wait (!%p550_p2), %s428_s27, 64  }
 0x26c   : > { %639 = vsyncadd (!%p550_p2), %s428_s27, 4294967232  ;;  %p14_p3 = scmp.ge.s32.totalorder %s713_s21, 4   ;;  %s804_s15 = smov %s646_s16 }
 0x26d   : > { %s805_s16 = smov %s650_s17  ;;  %s806_s17 = smov %s724_s24 }
 0x26e   : > { %s807_s18 = smov %s713_s21  ;;  %16 = sbr.rel (!%p14_p3) target bundleno = 3 (0x3), region = 74 }
 0x275   :  { %433 = vsyncpa [#allocation3], 1 }
 0x276   :  { %435 = vsyncpa [#allocation3 + $0x1], 1 }

</bundles_post_ra>
